<compile_context>
chip_gen: v5e
topology: v5e:2x2
jax: 0.10.0
libtpu: 0.0.40
codegen_flags: <defaults>
</compile_context>

<pallas_src>
import jax
import jax.numpy as jnp
from jax import lax
from jax.experimental import pallas as pl
from jax.experimental.pallas import tpu as pltpu


def encoder_lstm_kernel(xin_ref, wx_ref, wh_ref, b_ref, out_ref):
    Tp2, H2 = out_ref.shape          # (T + 2, 2H)
    T = Tp2 - 2
    H = H2 // 2

    wh = wh_ref[...]                 # (2H, 8H) hoisted out of the loop

    # Input projection for every timestep / direction / gate: one MXU matmul.
    # i/f/o columns are pre-scaled by 0.5 offline (tanh-identity sigmoid).
    xg = jnp.dot(xin_ref[...], wx_ref[...],
                 preferred_element_type=jnp.float32) + b_ref[...]     # (T, 8H)

    lane_is_fwd = lax.broadcasted_iota(jnp.int32, (1, H2), 1) < H      # (1, 2H)

    h = jnp.zeros((1, H2), jnp.float32)          # [h_fwd | h_bwd]
    c = jnp.zeros((1, H2), jnp.float32)          # [c_fwd | c_bwd]
    hs = []
    # T is small and static -> fully unrolled straight-line code; only the
    # single (1,2H)@(2H,8H) recurrent dot + 2 EUP launches sit on the serial
    # dependency chain.  (For large T, switch to lax.fori_loop accumulating
    # into a VMEM scratch to bound vreg live ranges.)
    for t in range(T):
        z = xg[t:t + 1, :] + jnp.dot(h, wh,
                                     preferred_element_type=jnp.float32)  # (1, 8H)
        th = jnp.tanh(z)                              # single EUP launch over 8H
        i = 0.5 * th[:, 0 * H:2 * H] + 0.5            # sigmoid via tanh identity
        f = 0.5 * th[:, 2 * H:4 * H] + 0.5
        g = th[:, 4 * H:6 * H]                        # cell gate: plain tanh
        o = 0.5 * th[:, 6 * H:8 * H] + 0.5
        c = f * c + i * g
        h = o * jnp.tanh(c)                           # second EUP launch (2H)
        hs.append(h)                                  # [h_f(t) | h_b(T-1-t)]

    # In-kernel reassembly to final PyTorch order: out[t] = [h_f(t) | h_b(t)].
    rows = [jnp.where(lane_is_fwd, hs[t], hs[T - 1 - t]) for t in range(T)]
    # Row T = final hidden ([h_f(T-1) | h_b(0)] == h after the loop); row T+1 = final cell.
    out_ref[...] = jnp.concatenate(rows + [h, c], axis=0)   # one (T+2, 2H) store


def encoder_forward(input_seq, params):
    emb = params["emb"]
    wx_blk = params["wx_blk"]        # (2E, 8H) block-diag per direction, gate-interleaved
    wh_blk = params["wh_blk"]        # (2H, 8H) block-diag per direction, gate-interleaved
    b = params["b"]                  # (1, 8H)

    T = input_seq.shape[0]
    E = emb.shape[1]
    H = wh_blk.shape[1] // 8

    # Embedding gather + backward-time arrangement in XLA (one small fusion,
    # outside the serial recurrence).  xin[t] = [x(t) | x(T-1-t)].
    x = jnp.take(emb, input_seq.astype(jnp.int32), axis=0)      # (T, E)
    xin = jnp.concatenate([x, x[::-1]], axis=1)                  # (T, 2E)

    flops = 2 * T * (2 * E) * (8 * H) + 2 * T * (2 * H) * (8 * H)
    transcendentals = T * 10 * H                                  # tanh(8H) + tanh(2H) / step
    bytes_accessed = 4 * (xin.size + wx_blk.size + wh_blk.size + b.size
                          + (T + 2) * 2 * H)

    slab = pl.pallas_call(
        encoder_lstm_kernel,
        out_shape=jax.ShapeDtypeStruct((T + 2, 2 * H), jnp.float32),
        in_specs=[
            pl.BlockSpec(memory_space=pltpu.MemorySpace.VMEM),   # xin
            pl.BlockSpec(memory_space=pltpu.MemorySpace.VMEM),   # wx_blk
            pl.BlockSpec(memory_space=pltpu.MemorySpace.VMEM),   # wh_blk
            pl.BlockSpec(memory_space=pltpu.MemorySpace.VMEM),   # bias
        ],
        out_specs=pl.BlockSpec(memory_space=pltpu.MemorySpace.VMEM),
        cost_estimate=pl.CostEstimate(flops=flops,
                                      transcendentals=transcendentals,
                                      bytes_accessed=bytes_accessed),
    )(xin, wx_blk, wh_blk, b)

    # Pure reshape/slice epilogue on one small slab.
    output = slab[:T].reshape(T, 1, 2 * H)       # already in PyTorch order
    h_n = slab[T].reshape(2, 1, H)               # [fwd final; bwd final]
    c_n = slab[T + 1].reshape(2, 1, H)
    return output, (h_n, c_n)


def init_params(key, vocab_size, hidden_dim, emb_dim):
    """Deterministic synthetic parameters (PyTorch-shaped), then repacked."""
    H = hidden_dim // 2
    E = emb_dim
    k1, k2, k3, k4, k5 = jax.random.split(key, 5)
    bound = 1.0 / float(jnp.sqrt(H))
    emb = jax.random.normal(k1, (vocab_size, emb_dim), jnp.float32)
    # PyTorch layout per direction: weight_ih (4H, E), weight_hh (4H, H), biases (4H,)
    w_ih = jax.random.uniform(k2, (2, 4 * H, emb_dim), jnp.float32, -bound, bound)
    w_hh = jax.random.uniform(k3, (2, 4 * H, H), jnp.float32, -bound, bound)
    b_ih = jax.random.uniform(k4, (2, 4 * H), jnp.float32, -bound, bound)
    b_hh = jax.random.uniform(k5, (2, 4 * H), jnp.float32, -bound, bound)
    raw = (emb, w_ih, w_hh, b_ih, b_hh)

    # Repack: per-gate transposed so matmuls are x @ W, then fuse both
    # directions and all 4 gates into block-diagonal / interleaved matrices.
    # Column block for (gate g, direction d) is (2*g + d)*H : (2*g + d + 1)*H.
    # Sigmoid-gate (i, f, o) columns are pre-scaled by 0.5 so the kernel can
    # compute sigmoid(z) = 0.5*tanh(z/2)+0.5 with a single tanh over all gates.
    wx = w_ih.reshape(2, 4, H, E).transpose(0, 1, 3, 2)   # (2, 4, E, H)
    wh = w_hh.reshape(2, 4, H, H).transpose(0, 1, 3, 2)   # (2, 4, H, H)
    bb = (b_ih + b_hh).reshape(2, 4, H)                   # (2, 4, H)

    wx_blk = jnp.zeros((2 * E, 8 * H), jnp.float32)
    wh_blk = jnp.zeros((2 * H, 8 * H), jnp.float32)
    b_cat = jnp.zeros((1, 8 * H), jnp.float32)
    for d in range(2):
        for g in range(4):
            col = (2 * g + d) * H
            s = 1.0 if g == 2 else 0.5    # g-gate stays plain tanh
            wx_blk = wx_blk.at[d * E:(d + 1) * E, col:col + H].set(s * wx[d, g])
            wh_blk = wh_blk.at[d * H:(d + 1) * H, col:col + H].set(s * wh[d, g])
            b_cat = b_cat.at[0, col:col + H].set(s * bb[d, g])

    params = {"emb": emb, "wx_blk": wx_blk, "wh_blk": wh_blk, "b": b_cat}
    return params, raw


def reference_forward(input_seq, raw, hidden_dim):
    """Pure-JAX reference matching PyTorch nn.LSTM(bidirectional=True) semantics."""
    emb, w_ih, w_hh, b_ih, b_hh = raw
    H = hidden_dim // 2
    x = emb[input_seq]                                          # (T, E)

    def run(d, xs):
        def cell(carry, xt):
            h, c = carry
            gates = w_ih[d] @ xt + w_hh[d] @ h + b_ih[d] + b_hh[d]
            i, f, g, o = jnp.split(gates, 4)
            i = jax.nn.sigmoid(i); f = jax.nn.sigmoid(f)
            g = jnp.tanh(g); o = jax.nn.sigmoid(o)
            c = f * c + i * g
            h = o * jnp.tanh(c)
            return (h, c), h
        (hT, cT), hs = lax.scan(cell, (jnp.zeros(H), jnp.zeros(H)), xs)
        return hs, hT, cT

    hs_f, hTf, cTf = run(0, x)
    hs_b, hTb, cTb = run(1, x[::-1])
    out = jnp.concatenate([hs_f, hs_b[::-1]], axis=-1).reshape(x.shape[0], 1, 2 * H)
    hn = jnp.stack([hTf, hTb]).reshape(2, 1, H)
    cn = jnp.stack([cTf, cTb]).reshape(2, 1, H)
    return out, (hn, cn)


if __name__ == "__main__":
    vocab_size, hidden_dim, emb_dim, seq_len = 50, 32, 32, 8

    key = jax.random.PRNGKey(0)
    pkey, ikey = jax.random.split(key)
    params, raw = init_params(pkey, vocab_size, hidden_dim, emb_dim)
    input_seq = jax.random.randint(ikey, (seq_len,), 0, vocab_size, dtype=jnp.int32)

    output, (h_n, c_n) = encoder_forward(input_seq, params)
    jax.block_until_ready((output, h_n, c_n))

    ref_out, (ref_hn, ref_cn) = reference_forward(input_seq, raw, hidden_dim)
    assert output.shape == (seq_len, 1, hidden_dim)
    assert h_n.shape == (2, 1, hidden_dim // 2) and c_n.shape == (2, 1, hidden_dim // 2)
    assert jnp.allclose(output, ref_out, atol=1e-5, rtol=1e-5)
    assert jnp.allclose(h_n, ref_hn, atol=1e-5, rtol=1e-5)
    assert jnp.allclose(c_n, ref_cn, atol=1e-5, rtol=1e-5)

    print("KERNEL_OK")
</pallas_src>

<mosaic_0001>
module attributes {stable_mosaic.version = 11 : i64} {
  func.func @encoder_lstm_kernel(%arg0: memref<8x64xf32, #tpu.memory_space<vmem>>, %arg1: memref<64x128xf32, #tpu.memory_space<vmem>>, %arg2: memref<32x128xf32, #tpu.memory_space<vmem>>, %arg3: memref<1x128xf32, #tpu.memory_space<vmem>>, %arg4: memref<10x32xf32, #tpu.memory_space<vmem>>) attributes {dimension_semantics = [], scalar_prefetch = 0 : i64, scratch_operands = 0 : i64, tpu.core_type = #tpu.core_type<tc>} {
    %c0 = arith.constant 0 : index
    %c0_0 = arith.constant 0 : index
    %0 = vector.load %arg2[%c0, %c0_0] : memref<32x128xf32, #tpu.memory_space<vmem>>, vector<32x128xf32>
    %c0_1 = arith.constant 0 : index
    %c0_2 = arith.constant 0 : index
    %1 = vector.load %arg0[%c0_1, %c0_2] : memref<8x64xf32, #tpu.memory_space<vmem>>, vector<8x64xf32>
    %c0_3 = arith.constant 0 : index
    %c0_4 = arith.constant 0 : index
    %2 = vector.load %arg1[%c0_3, %c0_4] : memref<64x128xf32, #tpu.memory_space<vmem>>, vector<64x128xf32>
    %cst = arith.constant dense<0.000000e+00> : vector<8x128xf32>
    %3 = tpu.matmul %1, %2, %cst {dimension_numbers = #tpu.dot_dimension_numbers<[1], [0], [0], [1], [0, 0, 1, 1], [], []>} : vector<8x64xf32>, vector<64x128xf32>, vector<8x128xf32> -> vector<8x128xf32>
    %c0_5 = arith.constant 0 : index
    %c0_6 = arith.constant 0 : index
    %4 = vector.load %arg3[%c0_5, %c0_6] : memref<1x128xf32, #tpu.memory_space<vmem>>, vector<1x128xf32>
    %5 = vector.broadcast %4 : vector<1x128xf32> to vector<8x128xf32>
    %6 = arith.addf %3, %5 : vector<8x128xf32>
    %7 = tpu.iota {dimensions = array<i32: 1>} : vector<1x32xi32>
    %c16_i32 = arith.constant 16 : i32
    %8 = vector.broadcast %c16_i32 : i32 to vector<1x32xi32>
    %9 = arith.cmpi slt, %7, %8 : vector<1x32xi32>
    %cst_7 = arith.constant 0.000000e+00 : f32
    %10 = vector.broadcast %cst_7 : f32 to vector<1x32xf32>
    %cst_8 = arith.constant 0.000000e+00 : f32
    %11 = vector.broadcast %cst_8 : f32 to vector<1x32xf32>
    %12 = vector.extract_strided_slice %6 {offsets = [0, 0], sizes = [1, 128], strides = [1, 1]} : vector<8x128xf32> to vector<1x128xf32>
    %cst_9 = arith.constant dense<0.000000e+00> : vector<1x128xf32>
    %13 = tpu.matmul %10, %0, %cst_9 {dimension_numbers = #tpu.dot_dimension_numbers<[1], [0], [0], [1], [0, 0, 1, 1], [], []>} : vector<1x32xf32>, vector<32x128xf32>, vector<1x128xf32> -> vector<1x128xf32>
    %14 = arith.addf %12, %13 : vector<1x128xf32>
    %15 = math.tanh %14 : vector<1x128xf32>
    %16 = vector.extract_strided_slice %15 {offsets = [0, 0], sizes = [1, 32], strides = [1, 1]} : vector<1x128xf32> to vector<1x32xf32>
    %cst_10 = arith.constant 5.000000e-01 : f32
    %17 = vector.broadcast %cst_10 : f32 to vector<1x32xf32>
    %18 = arith.mulf %17, %16 : vector<1x32xf32>
    %cst_11 = arith.constant 5.000000e-01 : f32
    %19 = vector.broadcast %cst_11 : f32 to vector<1x32xf32>
    %20 = arith.addf %18, %19 : vector<1x32xf32>
    %21 = vector.extract_strided_slice %15 {offsets = [0, 32], sizes = [1, 32], strides = [1, 1]} : vector<1x128xf32> to vector<1x32xf32>
    %cst_12 = arith.constant 5.000000e-01 : f32
    %22 = vector.broadcast %cst_12 : f32 to vector<1x32xf32>
    %23 = arith.mulf %22, %21 : vector<1x32xf32>
    %cst_13 = arith.constant 5.000000e-01 : f32
    %24 = vector.broadcast %cst_13 : f32 to vector<1x32xf32>
    %25 = arith.addf %23, %24 : vector<1x32xf32>
    %26 = vector.extract_strided_slice %15 {offsets = [0, 64], sizes = [1, 32], strides = [1, 1]} : vector<1x128xf32> to vector<1x32xf32>
    %27 = vector.extract_strided_slice %15 {offsets = [0, 96], sizes = [1, 32], strides = [1, 1]} : vector<1x128xf32> to vector<1x32xf32>
    %cst_14 = arith.constant 5.000000e-01 : f32
    %28 = vector.broadcast %cst_14 : f32 to vector<1x32xf32>
    %29 = arith.mulf %28, %27 : vector<1x32xf32>
    %cst_15 = arith.constant 5.000000e-01 : f32
    %30 = vector.broadcast %cst_15 : f32 to vector<1x32xf32>
    %31 = arith.addf %29, %30 : vector<1x32xf32>
    %32 = arith.mulf %25, %11 : vector<1x32xf32>
    %33 = arith.mulf %20, %26 : vector<1x32xf32>
    %34 = arith.addf %32, %33 : vector<1x32xf32>
    %35 = math.tanh %34 : vector<1x32xf32>
    %36 = arith.mulf %31, %35 : vector<1x32xf32>
    %37 = vector.extract_strided_slice %6 {offsets = [1, 0], sizes = [1, 128], strides = [1, 1]} : vector<8x128xf32> to vector<1x128xf32>
    %cst_16 = arith.constant dense<0.000000e+00> : vector<1x128xf32>
    %38 = tpu.matmul %36, %0, %cst_16 {dimension_numbers = #tpu.dot_dimension_numbers<[1], [0], [0], [1], [0, 0, 1, 1], [], []>} : vector<1x32xf32>, vector<32x128xf32>, vector<1x128xf32> -> vector<1x128xf32>
    %39 = arith.addf %37, %38 : vector<1x128xf32>
    %40 = math.tanh %39 : vector<1x128xf32>
    %41 = vector.extract_strided_slice %40 {offsets = [0, 0], sizes = [1, 32], strides = [1, 1]} : vector<1x128xf32> to vector<1x32xf32>
    %cst_17 = arith.constant 5.000000e-01 : f32
    %42 = vector.broadcast %cst_17 : f32 to vector<1x32xf32>
    %43 = arith.mulf %42, %41 : vector<1x32xf32>
    %cst_18 = arith.constant 5.000000e-01 : f32
    %44 = vector.broadcast %cst_18 : f32 to vector<1x32xf32>
    %45 = arith.addf %43, %44 : vector<1x32xf32>
    %46 = vector.extract_strided_slice %40 {offsets = [0, 32], sizes = [1, 32], strides = [1, 1]} : vector<1x128xf32> to vector<1x32xf32>
    %cst_19 = arith.constant 5.000000e-01 : f32
    %47 = vector.broadcast %cst_19 : f32 to vector<1x32xf32>
    %48 = arith.mulf %47, %46 : vector<1x32xf32>
    %cst_20 = arith.constant 5.000000e-01 : f32
    %49 = vector.broadcast %cst_20 : f32 to vector<1x32xf32>
    %50 = arith.addf %48, %49 : vector<1x32xf32>
    %51 = vector.extract_strided_slice %40 {offsets = [0, 64], sizes = [1, 32], strides = [1, 1]} : vector<1x128xf32> to vector<1x32xf32>
    %52 = vector.extract_strided_slice %40 {offsets = [0, 96], sizes = [1, 32], strides = [1, 1]} : vector<1x128xf32> to vector<1x32xf32>
    %cst_21 = arith.constant 5.000000e-01 : f32
    %53 = vector.broadcast %cst_21 : f32 to vector<1x32xf32>
    %54 = arith.mulf %53, %52 : vector<1x32xf32>
    %cst_22 = arith.constant 5.000000e-01 : f32
    %55 = vector.broadcast %cst_22 : f32 to vector<1x32xf32>
    %56 = arith.addf %54, %55 : vector<1x32xf32>
    %57 = arith.mulf %50, %34 : vector<1x32xf32>
    %58 = arith.mulf %45, %51 : vector<1x32xf32>
    %59 = arith.addf %57, %58 : vector<1x32xf32>
    %60 = math.tanh %59 : vector<1x32xf32>
    %61 = arith.mulf %56, %60 : vector<1x32xf32>
    %62 = vector.extract_strided_slice %6 {offsets = [2, 0], sizes = [1, 128], strides = [1, 1]} : vector<8x128xf32> to vector<1x128xf32>
    %cst_23 = arith.constant dense<0.000000e+00> : vector<1x128xf32>
    %63 = tpu.matmul %61, %0, %cst_23 {dimension_numbers = #tpu.dot_dimension_numbers<[1], [0], [0], [1], [0, 0, 1, 1], [], []>} : vector<1x32xf32>, vector<32x128xf32>, vector<1x128xf32> -> vector<1x128xf32>
    %64 = arith.addf %62, %63 : vector<1x128xf32>
    %65 = math.tanh %64 : vector<1x128xf32>
    %66 = vector.extract_strided_slice %65 {offsets = [0, 0], sizes = [1, 32], strides = [1, 1]} : vector<1x128xf32> to vector<1x32xf32>
    %cst_24 = arith.constant 5.000000e-01 : f32
    %67 = vector.broadcast %cst_24 : f32 to vector<1x32xf32>
    %68 = arith.mulf %67, %66 : vector<1x32xf32>
    %cst_25 = arith.constant 5.000000e-01 : f32
    %69 = vector.broadcast %cst_25 : f32 to vector<1x32xf32>
    %70 = arith.addf %68, %69 : vector<1x32xf32>
    %71 = vector.extract_strided_slice %65 {offsets = [0, 32], sizes = [1, 32], strides = [1, 1]} : vector<1x128xf32> to vector<1x32xf32>
    %cst_26 = arith.constant 5.000000e-01 : f32
    %72 = vector.broadcast %cst_26 : f32 to vector<1x32xf32>
    %73 = arith.mulf %72, %71 : vector<1x32xf32>
    %cst_27 = arith.constant 5.000000e-01 : f32
    %74 = vector.broadcast %cst_27 : f32 to vector<1x32xf32>
    %75 = arith.addf %73, %74 : vector<1x32xf32>
    %76 = vector.extract_strided_slice %65 {offsets = [0, 64], sizes = [1, 32], strides = [1, 1]} : vector<1x128xf32> to vector<1x32xf32>
    %77 = vector.extract_strided_slice %65 {offsets = [0, 96], sizes = [1, 32], strides = [1, 1]} : vector<1x128xf32> to vector<1x32xf32>
    %cst_28 = arith.constant 5.000000e-01 : f32
    %78 = vector.broadcast %cst_28 : f32 to vector<1x32xf32>
    %79 = arith.mulf %78, %77 : vector<1x32xf32>
    %cst_29 = arith.constant 5.000000e-01 : f32
    %80 = vector.broadcast %cst_29 : f32 to vector<1x32xf32>
    %81 = arith.addf %79, %80 : vector<1x32xf32>
    %82 = arith.mulf %75, %59 : vector<1x32xf32>
    %83 = arith.mulf %70, %76 : vector<1x32xf32>
    %84 = arith.addf %82, %83 : vector<1x32xf32>
    %85 = math.tanh %84 : vector<1x32xf32>
    %86 = arith.mulf %81, %85 : vector<1x32xf32>
    %87 = vector.extract_strided_slice %6 {offsets = [3, 0], sizes = [1, 128], strides = [1, 1]} : vector<8x128xf32> to vector<1x128xf32>
    %cst_30 = arith.constant dense<0.000000e+00> : vector<1x128xf32>
    %88 = tpu.matmul %86, %0, %cst_30 {dimension_numbers = #tpu.dot_dimension_numbers<[1], [0], [0], [1], [0, 0, 1, 1], [], []>} : vector<1x32xf32>, vector<32x128xf32>, vector<1x128xf32> -> vector<1x128xf32>
    %89 = arith.addf %87, %88 : vector<1x128xf32>
    %90 = math.tanh %89 : vector<1x128xf32>
    %91 = vector.extract_strided_slice %90 {offsets = [0, 0], sizes = [1, 32], strides = [1, 1]} : vector<1x128xf32> to vector<1x32xf32>
    %cst_31 = arith.constant 5.000000e-01 : f32
    %92 = vector.broadcast %cst_31 : f32 to vector<1x32xf32>
    %93 = arith.mulf %92, %91 : vector<1x32xf32>
    %cst_32 = arith.constant 5.000000e-01 : f32
    %94 = vector.broadcast %cst_32 : f32 to vector<1x32xf32>
    %95 = arith.addf %93, %94 : vector<1x32xf32>
    %96 = vector.extract_strided_slice %90 {offsets = [0, 32], sizes = [1, 32], strides = [1, 1]} : vector<1x128xf32> to vector<1x32xf32>
    %cst_33 = arith.constant 5.000000e-01 : f32
    %97 = vector.broadcast %cst_33 : f32 to vector<1x32xf32>
    %98 = arith.mulf %97, %96 : vector<1x32xf32>
    %cst_34 = arith.constant 5.000000e-01 : f32
    %99 = vector.broadcast %cst_34 : f32 to vector<1x32xf32>
    %100 = arith.addf %98, %99 : vector<1x32xf32>
    %101 = vector.extract_strided_slice %90 {offsets = [0, 64], sizes = [1, 32], strides = [1, 1]} : vector<1x128xf32> to vector<1x32xf32>
    %102 = vector.extract_strided_slice %90 {offsets = [0, 96], sizes = [1, 32], strides = [1, 1]} : vector<1x128xf32> to vector<1x32xf32>
    %cst_35 = arith.constant 5.000000e-01 : f32
    %103 = vector.broadcast %cst_35 : f32 to vector<1x32xf32>
    %104 = arith.mulf %103, %102 : vector<1x32xf32>
    %cst_36 = arith.constant 5.000000e-01 : f32
    %105 = vector.broadcast %cst_36 : f32 to vector<1x32xf32>
    %106 = arith.addf %104, %105 : vector<1x32xf32>
    %107 = arith.mulf %100, %84 : vector<1x32xf32>
    %108 = arith.mulf %95, %101 : vector<1x32xf32>
    %109 = arith.addf %107, %108 : vector<1x32xf32>
    %110 = math.tanh %109 : vector<1x32xf32>
    %111 = arith.mulf %106, %110 : vector<1x32xf32>
    %112 = vector.extract_strided_slice %6 {offsets = [4, 0], sizes = [1, 128], strides = [1, 1]} : vector<8x128xf32> to vector<1x128xf32>
    %cst_37 = arith.constant dense<0.000000e+00> : vector<1x128xf32>
    %113 = tpu.matmul %111, %0, %cst_37 {dimension_numbers = #tpu.dot_dimension_numbers<[1], [0], [0], [1], [0, 0, 1, 1], [], []>} : vector<1x32xf32>, vector<32x128xf32>, vector<1x128xf32> -> vector<1x128xf32>
    %114 = arith.addf %112, %113 : vector<1x128xf32>
    %115 = math.tanh %114 : vector<1x128xf32>
    %116 = vector.extract_strided_slice %115 {offsets = [0, 0], sizes = [1, 32], strides = [1, 1]} : vector<1x128xf32> to vector<1x32xf32>
    %cst_38 = arith.constant 5.000000e-01 : f32
    %117 = vector.broadcast %cst_38 : f32 to vector<1x32xf32>
    %118 = arith.mulf %117, %116 : vector<1x32xf32>
    %cst_39 = arith.constant 5.000000e-01 : f32
    %119 = vector.broadcast %cst_39 : f32 to vector<1x32xf32>
    %120 = arith.addf %118, %119 : vector<1x32xf32>
    %121 = vector.extract_strided_slice %115 {offsets = [0, 32], sizes = [1, 32], strides = [1, 1]} : vector<1x128xf32> to vector<1x32xf32>
    %cst_40 = arith.constant 5.000000e-01 : f32
    %122 = vector.broadcast %cst_40 : f32 to vector<1x32xf32>
    %123 = arith.mulf %122, %121 : vector<1x32xf32>
    %cst_41 = arith.constant 5.000000e-01 : f32
    %124 = vector.broadcast %cst_41 : f32 to vector<1x32xf32>
    %125 = arith.addf %123, %124 : vector<1x32xf32>
    %126 = vector.extract_strided_slice %115 {offsets = [0, 64], sizes = [1, 32], strides = [1, 1]} : vector<1x128xf32> to vector<1x32xf32>
    %127 = vector.extract_strided_slice %115 {offsets = [0, 96], sizes = [1, 32], strides = [1, 1]} : vector<1x128xf32> to vector<1x32xf32>
    %cst_42 = arith.constant 5.000000e-01 : f32
    %128 = vector.broadcast %cst_42 : f32 to vector<1x32xf32>
    %129 = arith.mulf %128, %127 : vector<1x32xf32>
    %cst_43 = arith.constant 5.000000e-01 : f32
    %130 = vector.broadcast %cst_43 : f32 to vector<1x32xf32>
    %131 = arith.addf %129, %130 : vector<1x32xf32>
    %132 = arith.mulf %125, %109 : vector<1x32xf32>
    %133 = arith.mulf %120, %126 : vector<1x32xf32>
    %134 = arith.addf %132, %133 : vector<1x32xf32>
    %135 = math.tanh %134 : vector<1x32xf32>
    %136 = arith.mulf %131, %135 : vector<1x32xf32>
    %137 = vector.extract_strided_slice %6 {offsets = [5, 0], sizes = [1, 128], strides = [1, 1]} : vector<8x128xf32> to vector<1x128xf32>
    %cst_44 = arith.constant dense<0.000000e+00> : vector<1x128xf32>
    %138 = tpu.matmul %136, %0, %cst_44 {dimension_numbers = #tpu.dot_dimension_numbers<[1], [0], [0], [1], [0, 0, 1, 1], [], []>} : vector<1x32xf32>, vector<32x128xf32>, vector<1x128xf32> -> vector<1x128xf32>
    %139 = arith.addf %137, %138 : vector<1x128xf32>
    %140 = math.tanh %139 : vector<1x128xf32>
    %141 = vector.extract_strided_slice %140 {offsets = [0, 0], sizes = [1, 32], strides = [1, 1]} : vector<1x128xf32> to vector<1x32xf32>
    %cst_45 = arith.constant 5.000000e-01 : f32
    %142 = vector.broadcast %cst_45 : f32 to vector<1x32xf32>
    %143 = arith.mulf %142, %141 : vector<1x32xf32>
    %cst_46 = arith.constant 5.000000e-01 : f32
    %144 = vector.broadcast %cst_46 : f32 to vector<1x32xf32>
    %145 = arith.addf %143, %144 : vector<1x32xf32>
    %146 = vector.extract_strided_slice %140 {offsets = [0, 32], sizes = [1, 32], strides = [1, 1]} : vector<1x128xf32> to vector<1x32xf32>
    %cst_47 = arith.constant 5.000000e-01 : f32
    %147 = vector.broadcast %cst_47 : f32 to vector<1x32xf32>
    %148 = arith.mulf %147, %146 : vector<1x32xf32>
    %cst_48 = arith.constant 5.000000e-01 : f32
    %149 = vector.broadcast %cst_48 : f32 to vector<1x32xf32>
    %150 = arith.addf %148, %149 : vector<1x32xf32>
    %151 = vector.extract_strided_slice %140 {offsets = [0, 64], sizes = [1, 32], strides = [1, 1]} : vector<1x128xf32> to vector<1x32xf32>
    %152 = vector.extract_strided_slice %140 {offsets = [0, 96], sizes = [1, 32], strides = [1, 1]} : vector<1x128xf32> to vector<1x32xf32>
    %cst_49 = arith.constant 5.000000e-01 : f32
    %153 = vector.broadcast %cst_49 : f32 to vector<1x32xf32>
    %154 = arith.mulf %153, %152 : vector<1x32xf32>
    %cst_50 = arith.constant 5.000000e-01 : f32
    %155 = vector.broadcast %cst_50 : f32 to vector<1x32xf32>
    %156 = arith.addf %154, %155 : vector<1x32xf32>
    %157 = arith.mulf %150, %134 : vector<1x32xf32>
    %158 = arith.mulf %145, %151 : vector<1x32xf32>
    %159 = arith.addf %157, %158 : vector<1x32xf32>
    %160 = math.tanh %159 : vector<1x32xf32>
    %161 = arith.mulf %156, %160 : vector<1x32xf32>
    %162 = vector.extract_strided_slice %6 {offsets = [6, 0], sizes = [1, 128], strides = [1, 1]} : vector<8x128xf32> to vector<1x128xf32>
    %cst_51 = arith.constant dense<0.000000e+00> : vector<1x128xf32>
    %163 = tpu.matmul %161, %0, %cst_51 {dimension_numbers = #tpu.dot_dimension_numbers<[1], [0], [0], [1], [0, 0, 1, 1], [], []>} : vector<1x32xf32>, vector<32x128xf32>, vector<1x128xf32> -> vector<1x128xf32>
    %164 = arith.addf %162, %163 : vector<1x128xf32>
    %165 = math.tanh %164 : vector<1x128xf32>
    %166 = vector.extract_strided_slice %165 {offsets = [0, 0], sizes = [1, 32], strides = [1, 1]} : vector<1x128xf32> to vector<1x32xf32>
    %cst_52 = arith.constant 5.000000e-01 : f32
    %167 = vector.broadcast %cst_52 : f32 to vector<1x32xf32>
    %168 = arith.mulf %167, %166 : vector<1x32xf32>
    %cst_53 = arith.constant 5.000000e-01 : f32
    %169 = vector.broadcast %cst_53 : f32 to vector<1x32xf32>
    %170 = arith.addf %168, %169 : vector<1x32xf32>
    %171 = vector.extract_strided_slice %165 {offsets = [0, 32], sizes = [1, 32], strides = [1, 1]} : vector<1x128xf32> to vector<1x32xf32>
    %cst_54 = arith.constant 5.000000e-01 : f32
    %172 = vector.broadcast %cst_54 : f32 to vector<1x32xf32>
    %173 = arith.mulf %172, %171 : vector<1x32xf32>
    %cst_55 = arith.constant 5.000000e-01 : f32
    %174 = vector.broadcast %cst_55 : f32 to vector<1x32xf32>
    %175 = arith.addf %173, %174 : vector<1x32xf32>
    %176 = vector.extract_strided_slice %165 {offsets = [0, 64], sizes = [1, 32], strides = [1, 1]} : vector<1x128xf32> to vector<1x32xf32>
    %177 = vector.extract_strided_slice %165 {offsets = [0, 96], sizes = [1, 32], strides = [1, 1]} : vector<1x128xf32> to vector<1x32xf32>
    %cst_56 = arith.constant 5.000000e-01 : f32
    %178 = vector.broadcast %cst_56 : f32 to vector<1x32xf32>
    %179 = arith.mulf %178, %177 : vector<1x32xf32>
    %cst_57 = arith.constant 5.000000e-01 : f32
    %180 = vector.broadcast %cst_57 : f32 to vector<1x32xf32>
    %181 = arith.addf %179, %180 : vector<1x32xf32>
    %182 = arith.mulf %175, %159 : vector<1x32xf32>
    %183 = arith.mulf %170, %176 : vector<1x32xf32>
    %184 = arith.addf %182, %183 : vector<1x32xf32>
    %185 = math.tanh %184 : vector<1x32xf32>
    %186 = arith.mulf %181, %185 : vector<1x32xf32>
    %187 = vector.extract_strided_slice %6 {offsets = [7, 0], sizes = [1, 128], strides = [1, 1]} : vector<8x128xf32> to vector<1x128xf32>
    %cst_58 = arith.constant dense<0.000000e+00> : vector<1x128xf32>
    %188 = tpu.matmul %186, %0, %cst_58 {dimension_numbers = #tpu.dot_dimension_numbers<[1], [0], [0], [1], [0, 0, 1, 1], [], []>} : vector<1x32xf32>, vector<32x128xf32>, vector<1x128xf32> -> vector<1x128xf32>
    %189 = arith.addf %187, %188 : vector<1x128xf32>
    %190 = math.tanh %189 : vector<1x128xf32>
    %191 = vector.extract_strided_slice %190 {offsets = [0, 0], sizes = [1, 32], strides = [1, 1]} : vector<1x128xf32> to vector<1x32xf32>
    %cst_59 = arith.constant 5.000000e-01 : f32
    %192 = vector.broadcast %cst_59 : f32 to vector<1x32xf32>
    %193 = arith.mulf %192, %191 : vector<1x32xf32>
    %cst_60 = arith.constant 5.000000e-01 : f32
    %194 = vector.broadcast %cst_60 : f32 to vector<1x32xf32>
    %195 = arith.addf %193, %194 : vector<1x32xf32>
    %196 = vector.extract_strided_slice %190 {offsets = [0, 32], sizes = [1, 32], strides = [1, 1]} : vector<1x128xf32> to vector<1x32xf32>
    %cst_61 = arith.constant 5.000000e-01 : f32
    %197 = vector.broadcast %cst_61 : f32 to vector<1x32xf32>
    %198 = arith.mulf %197, %196 : vector<1x32xf32>
    %cst_62 = arith.constant 5.000000e-01 : f32
    %199 = vector.broadcast %cst_62 : f32 to vector<1x32xf32>
    %200 = arith.addf %198, %199 : vector<1x32xf32>
    %201 = vector.extract_strided_slice %190 {offsets = [0, 64], sizes = [1, 32], strides = [1, 1]} : vector<1x128xf32> to vector<1x32xf32>
    %202 = vector.extract_strided_slice %190 {offsets = [0, 96], sizes = [1, 32], strides = [1, 1]} : vector<1x128xf32> to vector<1x32xf32>
    %cst_63 = arith.constant 5.000000e-01 : f32
    %203 = vector.broadcast %cst_63 : f32 to vector<1x32xf32>
    %204 = arith.mulf %203, %202 : vector<1x32xf32>
    %cst_64 = arith.constant 5.000000e-01 : f32
    %205 = vector.broadcast %cst_64 : f32 to vector<1x32xf32>
    %206 = arith.addf %204, %205 : vector<1x32xf32>
    %207 = arith.mulf %200, %184 : vector<1x32xf32>
    %208 = arith.mulf %195, %201 : vector<1x32xf32>
    %209 = arith.addf %207, %208 : vector<1x32xf32>
    %210 = math.tanh %209 : vector<1x32xf32>
    %211 = arith.mulf %206, %210 : vector<1x32xf32>
    %212 = arith.select %9, %36, %211 : vector<1x32xi1>, vector<1x32xf32>
    %213 = arith.select %9, %61, %186 : vector<1x32xi1>, vector<1x32xf32>
    %214 = arith.select %9, %86, %161 : vector<1x32xi1>, vector<1x32xf32>
    %215 = arith.select %9, %111, %136 : vector<1x32xi1>, vector<1x32xf32>
    %216 = arith.select %9, %136, %111 : vector<1x32xi1>, vector<1x32xf32>
    %217 = arith.select %9, %161, %86 : vector<1x32xi1>, vector<1x32xf32>
    %218 = arith.select %9, %186, %61 : vector<1x32xi1>, vector<1x32xf32>
    %219 = arith.select %9, %211, %36 : vector<1x32xi1>, vector<1x32xf32>
    %220 = tpu.concatenate %212, %213, %214, %215, %216, %217, %218, %219, %211, %209 in 0 : vector<1x32xf32>, vector<1x32xf32>, vector<1x32xf32>, vector<1x32xf32>, vector<1x32xf32>, vector<1x32xf32>, vector<1x32xf32>, vector<1x32xf32>, vector<1x32xf32>, vector<1x32xf32> -> vector<10x32xf32>
    %c0_65 = arith.constant 0 : index
    %c0_66 = arith.constant 0 : index
    %221 = vector.load %arg4[%c0_65, %c0_66] : memref<10x32xf32, #tpu.memory_space<vmem>>, vector<10x32xf32>
    tpu.vector_store %arg4[%c0_65, %c0_66], %220 {strides = array<i32>} : memref<10x32xf32, #tpu.memory_space<vmem>>, vector<10x32xf32>,
    return
  }
}

</mosaic_0001>

<bundles_post_ra>
// kernel: tpu_custom_call.1
= control target key start
LH: loop header
LB: loop body
LE: loop exit
PB: predicated region body
PF: predicated region fallthrough
CT: control target
= control target key end

     0   :  { %9 = vsyncpa [#allocation3], 0  ;;  %s903_s0 = inlined_call_operand.hbm [shape: f32[8,64], index: 0, kind: input, shape index: {}]   ;;  %s904_s1 = inlined_call_operand.hbm [shape: f32[64,128], index: 1, kind: input, shape index: {}]   ;;  %s905_s2 = inlined_call_operand.hbm [shape: f32[32,128], index: 2, kind: input, shape index: {}]   ;;  %s906_s3 = inlined_call_operand.vmem [shape: f32[1,128], index: 3, kind: input, shape index: {}]   ;;  %s907_s4 = inlined_call_operand.hbm [shape: f32[10,32], index: 4, kind: output, shape index: {}]  }
   0x1   :  { %10 = vsyncpa [#allocation6], 0  ;;  %s27_s17 = sshll.u32 %s904_s1, 4  ;;  %s28_s17 = int_to_ptr.hbm [resolvable:$true] %s27_s17 }
   0x2   :  { %11 = vsyncpa [#allocation4], 0  ;;  %s759_s18 = smov [#allocation5]   ;;  %s17_s22 = sshll.u32 %s903_s0, 4  ;;  %s18_s22 = int_to_ptr.hbm [resolvable:$true] %s17_s22 }
   0x3   :  { %s29_s19 = sshll.u32 %s759_s18, 4  ;;  %s760_s23 = smov 128   ;;  %s30_s19 = int_to_ptr.vmem [resolvable:$true] %s29_s19 }
   0x4   :  { %s761_s24 = smov 8   ;;  %s762_s25 = smov [#allocation2]  }
   0x5   :  { %35 = dma.hbm_to_vmem [thread:$0]  %s28_s17, 1024, %s30_s19, [#allocation6], %s760_s23, %s760_s23, %s761_s24  }
   0x6   :  { %s19_s26 = sshll.u32 %s762_s25, 4  ;;  %s40_s28 = sshll.u32 %s905_s2, 4  ;;  %s20_s26 = int_to_ptr.vmem [resolvable:$true] %s19_s26  ;;  %s41_s28 = int_to_ptr.hbm [resolvable:$true] %s40_s28 }
   0x7   :  { %22 = dma.hbm_to_vmem [thread:$0]  %s18_s22, 128, %s20_s26, [#allocation3]  }
   0x8   :  { %s763_s29 = smov [#allocation7]  }
   0x9   :  { %s42_s30 = sshll.u32 %s763_s29, 4  ;;  %s43_s30 = int_to_ptr.vmem [resolvable:$true] %s42_s30 }
   0xa   :  { %48 = dma.hbm_to_vmem [thread:$0]  %s41_s28, 512, %s43_s30, [#allocation6], %s760_s23, %s760_s23, %s761_s24  }
   0xb   :  { %753 = dma.done.wait [#allocation3], 128  }
   0xc   :  { %754 = vsyncadd [#allocation3], 4294967168 }
   0xd   :  { %755 = dma.done.wait [#allocation6], 1536  }
   0xe   :  { %756 = vsyncadd [#allocation6], 4294965760  ;;  %v75_v0 = vld [vmem:[#allocation5 + $0x38] sm:$0xff]  ;;  %v74_v1 = vld [vmem:[#allocation5 + $0x30] sm:$0xff]  ;;  %v764_v11 = vmov 0.0   ;;  %vm80_vm0 = vcmask 523264  }
   0xf   :  { %92 = vmatpush.msra.mxu0 %v75_v0  ;;  %v73_v2 = vld [vmem:[#allocation5 + $0x28] sm:$0xff]  ;;  %v66_v3 = vld [vmem:[#allocation7 + $0x18] sm:$0xff]  ;;  %v65_v4 = vld [vmem:[#allocation7 + $0x10] sm:$0xff]  ;;  %s765_s5 = smov 64   ;;  %s766_s6 = smov 32   ;;  %vm107_vm1 = vcmask 261120  }
  0x10   :  { %123 = vmatpush.msra.mxu1 %v66_v3  ;;  %v72_v5 = vld [vmem:[#allocation5 + $0x20] sm:$0xff]  ;;  %v64_v6 = vld [vmem:[#allocation7 + $0x8] sm:$0xff]  ;;  %169 = vmatpush.msra.mxu2 %v66_v3  ;;  %v71_v7 = vld [vmem:[#allocation5 + $0x18] sm:$0xff]  ;;  %vm568_vm3 = vcmask 1040384   ;;  %vm584_vm4 = vcmask 254976   ;;  %vm570_vm5 = vcmask 1041408  }
  0x11   :  { %93 = vmatpush.msra.mxu0 %v74_v1  ;;  %222 = vmatpush.msra.mxu3 %v66_v3  ;;  %v63_v8 = vld [vmem:[#allocation7] sm:$0xff]  ;;  %v70_v9 = vld [vmem:[#allocation5 + $0x10] sm:$0xff]  ;;  %v69_v10 = vld [vmem:[#allocation5 + $0x8] sm:$0xff]  ;;  %vm572_vm6 = vcmask 1042432   ;;  %vm574_vm7 = vcmask 1043456   ;;  %vm576_vm8 = vcmask 1044480  }
  0x12   :  { %124 = vmatpush.msra.mxu1 %v65_v4  ;;  %170 = vmatpush.msra.mxu2 %v65_v4  ;;  %v68_v12 = vld [vmem:[#allocation5] sm:$0xff]  ;;  %v67_v13 = vld [vmem:[#allocation2] sm:$0xff]  ;;  %vm578_vm9 = vcmask 1045504   ;;  %s768_s7 = smov [#allocation8]   ;;  %s592_s11 = sshll.u32 %s907_s4, 4  ;;  %vm580_vm10 = vcmask 1046528   ;;  %s593_s11 = int_to_ptr.hbm [resolvable:$true] %s592_s11 }
  0x13   :  { %94 = vmatpush.msra.mxu0 %v73_v2  ;;  %223 = vmatpush.msra.mxu3 %v65_v4  ;;  %v624_v14 = vld [vmem:[%s906_s3] ss:$0 sm:$0xff]  ;;  %s767_s3 = smov 96   ;;  %s590_s8 = sshll.u32 %s768_s7, 4  ;;  %s591_s8 = int_to_ptr.vmem [resolvable:$true] %s590_s8 }
  0x14   :  { %125 = vmatpush.msra.mxu1 %v64_v6  ;;  %171 = vmatpush.msra.mxu2 %v64_v6 }
  0x15   :  { %95 = vmatpush.msra.mxu0 %v72_v5  ;;  %224 = vmatpush.msra.mxu3 %v64_v6 }
  0x16   :  { %126 = vmatpush.msra.mxu1 %v63_v8  ;;  %172 = vmatpush.msra.mxu2 %v63_v8 }
  0x17   :  { %96 = vmatpush.msra.mxu0 %v71_v7  ;;  %127 = vmatmul.f32.vlgmr.msra.gmra.mxu1 %v764_v11 }
  0x18   :  { %225 = vmatpush.msra.mxu3 %v63_v8  ;;  %275 = vmatpush.msrb.mxu1 %v66_v3 }
  0x19   :  { %97 = vmatpush.msra.mxu0 %v70_v9  ;;  %328 = vmatpush.msrb.mxu2 %v66_v3 }
  0x1a   :  { %381 = vmatpush.msrb.mxu3 %v66_v3  ;;  %276 = vmatpush.msrb.mxu1 %v65_v4 }
  0x1b   :  { %98 = vmatpush.msra.mxu0 %v69_v10  ;;  %329 = vmatpush.msrb.mxu2 %v65_v4 }
  0x1c   :  { %382 = vmatpush.msrb.mxu3 %v65_v4  ;;  %277 = vmatpush.msrb.mxu1 %v64_v6 }
  0x1d   :  { %99 = vmatpush.msra.mxu0 %v68_v12  ;;  %330 = vmatpush.msrb.mxu2 %v64_v6 }
  0x1e   :  { %606 = vmatmul.msk.f32.vlgmr.msra.gmra.mxu0 %vm80_vm0, %v67_v13  ;;  %383 = vmatpush.msrb.mxu3 %v64_v6 }
  0x1f   :  { %278 = vmatpush.msrb.mxu1 %v63_v8  ;;  %434 = vmatpush.msrb.mxu0 %v66_v3 }
  0x20   :  { %331 = vmatpush.msrb.mxu2 %v63_v8  ;;  %384 = vmatpush.msrb.mxu3 %v63_v8 }
  0x21   :  { %435 = vmatpush.msrb.mxu0 %v65_v4  ;;  %487 = vmatpush.msra.mxu1 %v66_v3 }
  0x23   :  { %436 = vmatpush.msrb.mxu0 %v64_v6  ;;  %488 = vmatpush.msra.mxu1 %v65_v4 }
  0x25   :  { %437 = vmatpush.msrb.mxu0 %v63_v8  ;;  %489 = vmatpush.msra.mxu1 %v64_v6 }
  0x27   :  { %490 = vmatpush.msra.mxu1 %v63_v8 }
  0x94   :  { %v128_v16 = vpop.f32.mrf.mxu1 }
  0x9b   :  { %v101_v15 = vpop.f32.mrf.mxu0 }
  0x9c   :  { %v812_v17 = vadd.f32 %v624_v14, %v101_v15 }
  0x9e   :  { %v131_v18 = vadd.f32 %v128_v16, %v812_v17 }
  0xa0   :  { %625 = vtanh.f32 %v131_v18 }
  0xa6   :  { %v626_v19 = vpop.eup %625 }
  0xa7   :  { %137 = vrot.lane.b32.xlu0 %v626_v19, %s765_s5  ;;  %v133_v20 = vmul.f32 0.5, %v626_v19 }
  0xa9   :  { %v134_v21 = vadd.f32 0.5, %v133_v20 }
  0xab   :  { %v135_v24 = vmul.f32 0.0, %v134_v21 }
 0x119   :  { %v138_v22 = vpop.permute.xlu0 %137 }
 0x11a   :  { %v140_v23 = vmul.f32 %v138_v22, %v134_v21 }
 0x11c   :  { %142 = vrot.lane.b32.xlu0 %v140_v23, %s766_s6 }
 0x18e   :  { %v143_v25 = vpop.permute.xlu0 %142 }
 0x18f   :  { %v145_v26 = vadd.f32 %v143_v25, %v135_v24 }
 0x191   :  { %627 = vtanh.f32 %v145_v26  ;;  %v185_v39 = vrot.slane %v145_v26, 7 }
 0x197   :  { %v628_v27 = vpop.eup %627 }
 0x198   :  { %148 = vrot.lane.b32.xlu1 %v628_v27, %s765_s5 }
 0x20a   :  { %v149_v28 = vpop.permute.xlu1 %148 }
 0x20b   :  { %v151_v29 = vmul.f32 %v149_v28, %v134_v21 }
 0x20d   :  { %153 = vrot.lane.b32.xlu1 %v151_v29, %s766_s6 }
 0x27f   :  { %v819_v30 = vpop.permute.xlu1 %153 }
 0x280   :  { %607 = vmatmul.msk.f32.vlgmr.msra.gmra.mxu2 %vm107_vm1, %v819_v30 }
 0x303   :  { %v174_v31 = vpop.f32.mrf.mxu2 }
 0x304   :  { %v178_v32 = vrot.slane %v174_v31, 7 }
 0x306   :  { %v180_v33 = vadd.f32 %v178_v32, %v812_v17 }
 0x308   :  { %629 = vtanh.f32 %v180_v33 }
 0x30e   :  { %v630_v34 = vpop.eup %629 }
 0x30f   :  { %189 = vrot.lane.b32.xlu2 %v630_v34, %s765_s5  ;;  %v182_v35 = vmul.f32 0.5, %v630_v34 }
 0x311   :  { %v183_v36 = vadd.f32 0.5, %v182_v35 }
 0x313   :  { %v187_v40 = vmul.f32 %v185_v39, %v183_v36 }
 0x369   :  { %v190_v37 = vpop.permute.xlu2 %189 }
 0x36a   :  { %v192_v38 = vmul.f32 %v190_v37, %v183_v36 }
 0x36c   :  { %194 = vrot.lane.b32.xlu2 %v192_v38, %s766_s6 }
 0x3c6   :  { %v195_v41 = vpop.permute.xlu2 %194 }
 0x3c7   :  { %v197_v42 = vadd.f32 %v195_v41, %v187_v40 }
 0x3c9   :  { %631 = vtanh.f32 %v197_v42  ;;  %v238_v56 = vrot.slane %v197_v42, 7 }
 0x3cf   :  { %v632_v43 = vpop.eup %631 }
 0x3d0   :  { %200 = vrot.lane.b32.xlu0 %v632_v43, %s765_s5 }
 0x442   :  { %v201_v44 = vpop.permute.xlu0 %200 }
 0x443   :  { %v203_v45 = vmul.f32 %v201_v44, %v183_v36 }
 0x445   :  { %v205_v46 = vrot.slane %v203_v45, 1 }
 0x447   :  { %206 = vrot.lane.b32.xlu1 %v205_v46, %s766_s6 }
 0x4b9   :  { %v828_v47 = vpop.permute.xlu1 %206 }
 0x4ba   :  { %608 = vmatmul.msk.f32.vlgmr.msra.gmra.mxu3 %vm107_vm1, %v828_v47 }
 0x53d   :  { %v227_v48 = vpop.f32.mrf.mxu3 }
 0x53e   :  { %v231_v49 = vrot.slane %v227_v48, 6 }
 0x540   :  { %v233_v50 = vadd.f32 %v231_v49, %v812_v17 }
 0x542   :  { %633 = vtanh.f32 %v233_v50 }
 0x548   :  { %v634_v51 = vpop.eup %633 }
 0x549   :  { %242 = vrot.lane.b32.xlu2 %v634_v51, %s765_s5  ;;  %v235_v52 = vmul.f32 0.5, %v634_v51 }
 0x54b   :  { %v236_v53 = vadd.f32 0.5, %v235_v52 }
 0x54d   :  { %v240_v57 = vmul.f32 %v238_v56, %v236_v53 }
 0x5a3   :  { %v243_v54 = vpop.permute.xlu2 %242 }
 0x5a4   :  { %v245_v55 = vmul.f32 %v243_v54, %v236_v53 }
 0x5a6   :  { %247 = vrot.lane.b32.xlu0 %v245_v55, %s766_s6 }
 0x618   :  { %v248_v58 = vpop.permute.xlu0 %247 }
 0x619   :  { %v250_v59 = vadd.f32 %v248_v58, %v240_v57 }
 0x61b   :  { %635 = vtanh.f32 %v250_v59  ;;  %v291_v9 = vrot.slane %v250_v59, 7 }
 0x621   :  { %v636_v60 = vpop.eup %635 }
 0x622   :  { %253 = vrot.lane.b32.xlu1 %v636_v60, %s765_s5 }
 0x694   :  { %v254_v61 = vpop.permute.xlu1 %253 }
 0x695   :  { %v256_v62 = vmul.f32 %v254_v61, %v236_v53 }
 0x697   :  { %v258_v63 = vrot.slane %v256_v62, 2 }
 0x699   :  { %259 = vrot.lane.b32.xlu2 %v258_v63, %s766_s6 }
 0x6f3   :  { %v837_v0 = vpop.permute.xlu2 %259 }
 0x6f4   :  { %609 = vmatmul.msk.f32.vlgmr.msrb.gmra.mxu1 %vm107_vm1, %v837_v0 }
 0x771   :  { %v280_v1 = vpop.f32.mrf.mxu1 }
 0x772   :  { %v284_v2 = vrot.slane %v280_v1, 5 }
 0x774   :  { %v286_v3 = vadd.f32 %v284_v2, %v812_v17 }
 0x776   :  { %637 = vtanh.f32 %v286_v3 }
 0x77c   :  { %v638_v4 = vpop.eup %637 }
 0x77d   :  { %295 = vrot.lane.b32.xlu0 %v638_v4, %s765_s5  ;;  %v288_v5 = vmul.f32 0.5, %v638_v4 }
 0x77f   :  { %v289_v6 = vadd.f32 0.5, %v288_v5 }
 0x781   :  { %v293_v10 = vmul.f32 %v291_v9, %v289_v6 }
 0x7ef   :  { %v296_v7 = vpop.permute.xlu0 %295 }
 0x7f0   :  { %v298_v8 = vmul.f32 %v296_v7, %v289_v6 }
 0x7f2   :  { %300 = vrot.lane.b32.xlu1 %v298_v8, %s766_s6 }
 0x864   :  { %v301_v11 = vpop.permute.xlu1 %300 }
 0x865   :  { %v303_v12 = vadd.f32 %v301_v11, %v293_v10 }
 0x867   :  { %639 = vtanh.f32 %v303_v12  ;;  %v344_v27 = vrot.slane %v303_v12, 7 }
 0x86d   :  { %v640_v13 = vpop.eup %639 }
 0x86e   :  { %306 = vrot.lane.b32.xlu2 %v640_v13, %s765_s5 }
 0x8c8   :  { %v307_v14 = vpop.permute.xlu2 %306 }
 0x8c9   :  { %v309_v15 = vmul.f32 %v307_v14, %v289_v6 }
 0x8cb   :  { %v311_v16 = vrot.slane %v309_v15, 3 }
 0x8cd   :  { %312 = vrot.lane.b32.xlu0 %v311_v16, %s766_s6 }
 0x93f   :  { %v846_v18 = vpop.permute.xlu0 %312 }
 0x940   :  { %610 = vmatmul.msk.f32.vlgmr.msrb.gmra.mxu2 %vm107_vm1, %v846_v18 }
 0x9c3   :  { %v333_v19 = vpop.f32.mrf.mxu2 }
 0x9c4   :  { %v337_v20 = vrot.slane %v333_v19, 4 }
 0x9c6   :  { %v339_v21 = vadd.f32 %v337_v20, %v812_v17 }
 0x9c8   :  { %641 = vtanh.f32 %v339_v21 }
 0x9ce   :  { %v642_v22 = vpop.eup %641 }
 0x9cf   :  { %348 = vrot.lane.b32.xlu1 %v642_v22, %s765_s5  ;;  %v341_v23 = vmul.f32 0.5, %v642_v22 }
 0x9d1   :  { %v342_v24 = vadd.f32 0.5, %v341_v23 }
 0x9d3   :  { %v346_v28 = vmul.f32 %v344_v27, %v342_v24  ;;  %v104_v27 = vlaneseq }
 0xa41   :  { %v349_v25 = vpop.permute.xlu1 %348 }
 0xa42   :  { %v351_v26 = vmul.f32 %v349_v25, %v342_v24 }
 0xa44   :  { %353 = vrot.lane.b32.xlu2 %v351_v26, %s766_s6 }
 0xa9e   :  { %v354_v29 = vpop.permute.xlu2 %353 }
 0xa9f   :  { %v356_v31 = vadd.f32 %v354_v29, %v346_v28  ;;  %v105_v28 = vand.u32 127, %v104_v27 }
 0xaa1   :  { %643 = vtanh.f32 %v356_v31  ;;  %v397_v45 = vrot.slane %v356_v31, 7  ;;  %vm106_vm2 = vcmp.lt.s32.totalorder %v105_v28, 16 }
 0xaa7   :  { %v644_v32 = vpop.eup %643 }
 0xaa8   :  { %359 = vrot.lane.b32.xlu0 %v644_v32, %s765_s5 }
 0xb1a   :  { %v360_v33 = vpop.permute.xlu0 %359 }
 0xb1b   :  { %v362_v34 = vmul.f32 %v360_v33, %v342_v24 }
 0xb1d   :  { %v364_v35 = vrot.slane %v362_v34, 4 }
 0xb1f   :  { %365 = vrot.lane.b32.xlu1 %v364_v35, %s766_s6 }
 0xb91   :  { %v855_v36 = vpop.permute.xlu1 %365 }
 0xb92   :  { %611 = vmatmul.msk.f32.vlgmr.msrb.gmra.mxu3 %vm107_vm1, %v855_v36  ;;  %v537_v32 = vsel %vm106_vm2, %v846_v18, %v855_v36  ;;  %v538_v33 = vsel %vm106_vm2, %v855_v36, %v846_v18 }
 0xc15   :  { %v386_v37 = vpop.f32.mrf.mxu3 }
 0xc16   :  { %v390_v38 = vrot.slane %v386_v37, 3 }
 0xc18   :  { %v392_v39 = vadd.f32 %v390_v38, %v812_v17 }
 0xc1a   :  { %645 = vtanh.f32 %v392_v39 }
 0xc20   :  { %v646_v40 = vpop.eup %645 }
 0xc21   :  { %401 = vrot.lane.b32.xlu2 %v646_v40, %s765_s5  ;;  %v394_v41 = vmul.f32 0.5, %v646_v40 }
 0xc23   :  { %v395_v42 = vadd.f32 0.5, %v394_v41 }
 0xc25   :  { %v399_v46 = vmul.f32 %v397_v45, %v395_v42 }
 0xc7b   :  { %v402_v43 = vpop.permute.xlu2 %401 }
 0xc7c   :  { %v404_v44 = vmul.f32 %v402_v43, %v395_v42 }
 0xc7e   :  { %406 = vrot.lane.b32.xlu0 %v404_v44, %s766_s6 }
 0xcf0   :  { %v407_v48 = vpop.permute.xlu0 %406 }
 0xcf1   :  { %v409_v49 = vadd.f32 %v407_v48, %v399_v46 }
 0xcf3   :  { %647 = vtanh.f32 %v409_v49  ;;  %v450_v63 = vrot.slane %v409_v49, 7 }
 0xcf9   :  { %v648_v50 = vpop.eup %647 }
 0xcfa   :  { %412 = vrot.lane.b32.xlu1 %v648_v50, %s765_s5 }
 0xd6c   :  { %v413_v51 = vpop.permute.xlu1 %412 }
 0xd6d   :  { %v415_v52 = vmul.f32 %v413_v51, %v395_v42  ;;  %v549_v42 = vrot.slane %v537_v32, 5 }
 0xd6f   :  { %v417_v53 = vrot.slane %v415_v52, 5 }
 0xd71   :  { %418 = vrot.lane.b32.xlu2 %v417_v53, %s766_s6 }
 0xdcb   :  { %v419_v54 = vpop.permute.xlu2 %418 }
 0xdcc   :  { %612 = vmatmul.msk.f32.vlgmr.msrb.gmra.mxu0 %vm107_vm1, %v419_v54  ;;  %v534_v31 = vsel %vm106_vm2, %v837_v0, %v419_v54  ;;  %v539_v34 = vsel %vm106_vm2, %v419_v54, %v837_v0  ;;  %v552_v0 = vrot.slane %v538_v33, 4 }
 0xdcd   :  { %v546_v39 = vrot.slane %v534_v31, 6  ;;  %v555_v45 = vrot.slane %v539_v34, 3 }
 0xe49   :  { %v439_v55 = vpop.f32.mrf.mxu0 }
 0xe4a   :  { %v443_v56 = vrot.slane %v439_v55, 2 }
 0xe4c   :  { %v445_v57 = vadd.f32 %v443_v56, %v812_v17 }
 0xe4e   :  { %649 = vtanh.f32 %v445_v57 }
 0xe54   :  { %v650_v58 = vpop.eup %649 }
 0xe55   :  { %454 = vrot.lane.b32.xlu0 %v650_v58, %s765_s5  ;;  %v447_v59 = vmul.f32 0.5, %v650_v58 }
 0xe57   :  { %v448_v60 = vadd.f32 0.5, %v447_v59 }
 0xe59   :  { %v452_v1 = vmul.f32 %v450_v63, %v448_v60 }
 0xec7   :  { %v455_v61 = vpop.permute.xlu0 %454 }
 0xec8   :  { %v457_v62 = vmul.f32 %v455_v61, %v448_v60 }
 0xeca   :  { %459 = vrot.lane.b32.xlu1 %v457_v62, %s766_s6 }
 0xf3c   :  { %v460_v2 = vpop.permute.xlu1 %459 }
 0xf3d   :  { %v462_v3 = vadd.f32 %v460_v2, %v452_v1 }
 0xf3f   :  { %651 = vtanh.f32 %v462_v3  ;;  %v503_v19 = vrot.slane %v462_v3, 7 }
 0xf45   :  { %v652_v4 = vpop.eup %651 }
 0xf46   :  { %465 = vrot.lane.b32.xlu2 %v652_v4, %s765_s5 }
 0xfa0   :  { %v466_v5 = vpop.permute.xlu2 %465 }
 0xfa1   :  { %v468_v6 = vmul.f32 %v466_v5, %v448_v60 }
 0xfa3   :  { %v470_v7 = vrot.slane %v468_v6, 6 }
 0xfa5   :  { %471 = vrot.lane.b32.xlu0 %v470_v7, %s766_s6 }
0x1017   :  { %v472_v8 = vpop.permute.xlu0 %471 }
0x1018   :  { %613 = vmatmul.msk.f32.vlgmr.msra.gmra.mxu1 %vm107_vm1, %v472_v8  ;;  %v531_v29 = vsel %vm106_vm2, %v828_v47, %v472_v8  ;;  %v540_v43 = vsel %vm106_vm2, %v472_v8, %v828_v47 }
0x1019   :  { %v543_v35 = vrot.slane %v531_v29, 7  ;;  %v558_v47 = vrot.slane %v540_v43, 2 }
0x1095   :  { %v492_v9 = vpop.f32.mrf.mxu1 }
0x1096   :  { %v496_v10 = vrot.slane %v492_v9, 1 }
0x1098   :  { %v498_v11 = vadd.f32 %v496_v10, %v812_v17 }
0x109a   :  { %653 = vtanh.f32 %v498_v11 }
0x10a0   :  { %v654_v12 = vpop.eup %653 }
0x10a1   :  { %507 = vrot.lane.b32.xlu1 %v654_v12, %s765_s5  ;;  %v500_v13 = vmul.f32 0.5, %v654_v12 }
0x10a3   :  { %v501_v14 = vadd.f32 0.5, %v500_v13 }
0x10a5   :  { %v505_v20 = vmul.f32 %v503_v19, %v501_v14 }
0x1113   :  { %v508_v15 = vpop.permute.xlu1 %507 }
0x1114   :  { %v510_v16 = vmul.f32 %v508_v15, %v501_v14 }
0x1116   :  { %512 = vrot.lane.b32.xlu2 %v510_v16, %s766_s6 }
0x1170   :  { %v513_v21 = vpop.permute.xlu2 %512 }
0x1171   :  { %v515_v22 = vadd.f32 %v513_v21, %v505_v20 }
0x1173   :  { %655 = vtanh.f32 %v515_v22  ;;  %v564_v23 = vrot.slane %v515_v22, 6 }
0x1175   :  { %565 = vrot.lane.b32.xlu2 %v564_v23, %s767_s3 }
0x1179   :  { %v656_v24 = vpop.eup %655 }
0x117a   :  { %518 = vrot.lane.b32.xlu0 %v656_v24, %s765_s5 }
0x11cf   :  { %v566_v37 = vpop.permute.xlu2 %565 }
0x11ec   :  { %v519_v17 = vpop.permute.xlu0 %518 }
0x11ed   :  { %v521_v25 = vmul.f32 %v519_v17, %v501_v14 }
0x11ef   :  { %v524_v26 = vrot.slane %v521_v25, 7 }
0x11f1   :  { %525 = vrot.lane.b32.xlu1 %v524_v26, %s766_s6 }
0x1263   :  { %v526_v38 = vpop.permute.xlu1 %525 }
0x1264   :  { %v528_v40 = vsel %vm106_vm2, %v819_v30, %v526_v38  ;;  %v582_v41 = vsel %vm568_vm3, %v526_v38, %v566_v37  ;;  %v541_v36 = vsel %vm106_vm2, %v526_v38, %v819_v30 }
0x1265   :  { %v569_v18 = vsel %vm568_vm3, %v528_v40, %v543_v35  ;;  %585 = vst.msk [vmem:[#allocation8 + $0x8] sm:$0x3] %vm584_vm4, %v582_v41  ;;  %v561_v49 = vrot.slane %v541_v36, 1 }
0x1266   :  { %v571_v44 = vsel %vm570_vm5, %v569_v18, %v546_v39 }
0x1267   :  { %v573_v46 = vsel %vm572_vm6, %v571_v44, %v549_v42 }
0x1268   :  { %v575_v48 = vsel %vm574_vm7, %v573_v46, %v552_v0 }
0x1269   :  { %v577_v50 = vsel %vm576_vm8, %v575_v48, %v555_v45 }
0x126a   :  { %v579_v51 = vsel %vm578_vm9, %v577_v50, %v558_v47 }
0x126b   :  { %v581_v52 = vsel %vm580_vm10, %v579_v51, %v561_v49 }
0x126c   :  { %583 = vst.msk [vmem:[#allocation8] sm:$0xff] %vm107_vm1, %v581_v52 }
0x126d   :  { %598 = dma.vmem_to_hbm [thread:$0]  %s591_s8, 256, %s593_s11, [#allocation4], %s760_s23, %s760_s23, %s761_s24  }
0x126e   :  { %757 = dma.done.wait [#allocation4], 256  }
0x126f   :  { %758 = vsyncadd [#allocation4], 4294967040 }
0x1270   :  { %603 = vsyncpa [#allocation3], 1 }
0x1271   :  { %604 = vsyncpa [#allocation6], 1 }
0x1272   :  { %605 = vsyncpa [#allocation4], 1 }

</bundles_post_ra>
